<compile_context>
chip_gen: v5e
topology: v5e:2x2
jax: 0.10.0
libtpu: 0.0.40
codegen_flags: <defaults>
</compile_context>

<pallas_src>
import functools
import itertools

import jax
import jax.numpy as jnp
from jax.experimental import pallas as pl
from jax.experimental.pallas import tpu as pltpu

# torchvision vgg19 feature configuration "E"
CFG_E = [64, 64, "M", 128, 128, "M", 256, 256, 256, 256, "M",
         512, 512, 512, 512, "M", 512, 512, 512, 512, "M"]

LANE = 128
FIRST_K_PAD = 32                        # 3x3x3 im2col K (27) padded to 32
CONV_VMEM_LIMIT = 32 * 1024 * 1024      # safe on v5e / v6e / v7x
FC_VMEM_LIMIT = 48 * 1024 * 1024        # <= v7x 64 MiB physical VMEM
FC_WEIGHT_BLOCK_BYTES = 14 * 1024 * 1024  # per-buffer cap (28 MiB double-buf)
_VMEM = pl.BlockSpec(memory_space=pltpu.MemorySpace.VMEM)


def _round_up(v, m):
    return (v + m - 1) // m * m


def _conv_row_tile(h):
    """Row-band height. Whole image for small maps; 16/8/4/2 otherwise."""
    if h % 2:
        raise ValueError(f"conv tiling assumes an even spatial size, got H={h}")
    if h <= 32:
        return h
    for t in (16, 8, 4, 2):
        if h % t == 0:
            return t
    return 2


def _pool_row_tile(h2):
    for t in (8, 4, 2, 1):
        if h2 % t == 0:
            return t
    return 1


def _fc_tiles(m, k, n):
    tm = m if m <= 256 else next(t for t in (256, 128, 64, 32, 16, 8)
                                 if m % t == 0)
    tn = 2048 if n % 2048 == 0 else n
    cands = [c for c in (3584, 2048, 1792, 1024, 512, 256, 128)
             if c <= k and k % c == 0 and c * tn * 2 <= FC_WEIGHT_BLOCK_BYTES]
    tk = cands[0] if cands else k
    return tm, tn, tk


# ----------------------------------------------------------------------------
# Pallas kernels
# ----------------------------------------------------------------------------
def _conv3x3_kernel(xm_ref, xh_ref, w_ref, b_ref, o_ref, acc_ref, band_ref,
                    *, th, w_out, relu):
    """Fused 3x3 conv (stride 1, pad 1) + bias + ReLU on one row band.

    xm_ref  : (1, th, W+2, Cin)  padded-input rows [t*th, t*th+th)
    xh_ref  : (1, 2,  W+2, Cin)  2-row halo directly below the band
    w_ref   : (3, 3, Cin, Cout)  bf16 weights (constant block -> resident)
    b_ref   : (1, Cout)          f32 bias
    o_ref   : (1, th, W, Cout)   bf16 output rows
    acc_ref : (th*W, Cout) f32   single VMEM accumulator
    band_ref: (th+2, W+2, Cin)   VMEM staging of the extended band
    """
    cin = band_ref.shape[-1]
    cout = o_ref.shape[-1]

    # Stage main band + halo contiguously so each shifted slab is one slice.
    band_ref[0:th] = xm_ref[0]
    band_ref[th:th + 2] = xh_ref[0]

    # 9 fused-tap GEMMs: M = th*W rows per matmul, one live accumulator.
    for dy in range(3):
        for dx in range(3):
            slab = band_ref[dy:dy + th, dx:dx + w_out, :].reshape(
                th * w_out, cin)
            contrib = jnp.dot(slab, w_ref[dy, dx],
                              preferred_element_type=jnp.float32)
            if dy == 0 and dx == 0:
                acc_ref[...] = contrib
            else:
                acc_ref[...] += contrib

    out = acc_ref[...] + b_ref[...].astype(jnp.float32)
    if relu:
        out = jnp.maximum(out, 0.0)
    o_ref[0] = out.astype(o_ref.dtype).reshape(th, w_out, cout)


def _gemm_bias_relu_kernel(a_ref, w_ref, b_ref, o_ref, *, relu):
    """Single-block GEMM + bias (+ReLU). Used by the im2col'd first conv."""
    out = jnp.dot(a_ref[...], w_ref[...], preferred_element_type=jnp.float32)
    out = out + b_ref[...].astype(jnp.float32)
    if relu:
        out = jnp.maximum(out, 0.0)
    o_ref[...] = out.astype(o_ref.dtype)


def _maxpool2x2_kernel(x_ref, o_ref):
    """2x2 / stride-2 max-pool on the packed (..., 2, W/2, 2*C) layout."""
    c = o_ref.shape[-1]
    a = jnp.maximum(x_ref[0, :, 0], x_ref[0, :, 1])    # rows 2i vs 2i+1
    o_ref[0] = jnp.maximum(a[..., :c], a[..., c:])     # cols 2j vs 2j+1


def _adaptive_avgpool_kernel(x_ref, o_ref, *, in_h, in_w, out_hw):
    """torch.nn.AdaptiveAvgPool2d((7, 7)) semantics (static window bounds)."""
    for i in range(out_hw):
        hs = (i * in_h) // out_hw
        he = ((i + 1) * in_h + out_hw - 1) // out_hw
        for j in range(out_hw):
            ws = (j * in_w) // out_hw
            we = ((j + 1) * in_w + out_hw - 1) // out_hw
            win = x_ref[:, hs:he, ws:we, :].astype(jnp.float32)
            s = jnp.sum(jnp.sum(win, axis=2), axis=1)          # (N, C)
            o_ref[:, i, j, :] = (
                s * (1.0 / ((he - hs) * (we - ws)))).astype(o_ref.dtype)


def _linear_kernel(a_ref, w_ref, b_ref, o_ref, acc_ref, *, relu):
    """Tiled GEMM with K-axis accumulation + fused bias (+ReLU) epilogue."""
    k = pl.program_id(2)

    @pl.when(k == 0)
    def _():
        acc_ref[...] = jnp.zeros_like(acc_ref)

    acc_ref[...] += jnp.dot(a_ref[...], w_ref[...],
                            preferred_element_type=jnp.float32)

    @pl.when(k == pl.num_programs(2) - 1)
    def _():
        out = acc_ref[...] + b_ref[...].astype(jnp.float32)
        if relu:
            out = jnp.maximum(out, 0.0)
        o_ref[...] = out.astype(o_ref.dtype)


# ----------------------------------------------------------------------------
# Wrappers
# ----------------------------------------------------------------------------
@functools.partial(jax.jit, static_argnames=("relu",))
def conv3x3_bias_relu(x, w, b, relu=True):
    """x: (N,H,W,Cin) bf16, w: (3,3,Cin,Cout) bf16, b: (1,Cout) f32."""
    n, h, wd, cin = x.shape
    cout = w.shape[-1]
    th = _conv_row_tile(h)
    xp = jnp.pad(x, ((0, 0), (1, 1), (1, 1), (0, 0)))       # zero padding = 1
    flops = 2 * n * h * wd * cin * cout * 9
    bytes_accessed = (2 * xp.size * xp.dtype.itemsize + w.size * 2
                      + b.size * 4 + n * h * wd * cout * 2)
    kern = functools.partial(_conv3x3_kernel, th=th, w_out=wd, relu=relu)
    return pl.pallas_call(
        kern,
        out_shape=jax.ShapeDtypeStruct((n, h, wd, cout), jnp.bfloat16),
        grid=(n, h // th),
        in_specs=[
            pl.BlockSpec((1, th, wd + 2, cin), lambda i, t: (i, t, 0, 0)),
            pl.BlockSpec((1, 2, wd + 2, cin),
                         lambda i, t: (i, (t + 1) * (th // 2), 0, 0)),
            pl.BlockSpec((3, 3, cin, cout), lambda i, t: (0, 0, 0, 0)),
            pl.BlockSpec((1, cout), lambda i, t: (0, 0)),
        ],
        out_specs=pl.BlockSpec((1, th, wd, cout), lambda i, t: (i, t, 0, 0)),
        scratch_shapes=[pltpu.VMEM((th * wd, cout), jnp.float32),
                        pltpu.VMEM((th + 2, wd + 2, cin), jnp.bfloat16)],
        compiler_params=pltpu.CompilerParams(
            dimension_semantics=("parallel", "parallel"),
            vmem_limit_bytes=CONV_VMEM_LIMIT),
        cost_estimate=pl.CostEstimate(flops=flops, transcendentals=0,
                                      bytes_accessed=bytes_accessed),
    )(xp, xp, w, b)


@functools.partial(jax.jit, static_argnames=("relu",))
def conv3x3_first(x, wmat, b, relu=True):
    """First conv (cin=3) as an im2col GEMM: x (N,H,W,3) bf16,
    wmat (32, Cout) bf16 (rows = dy-major, dx, cin; zero-padded), b (1,Cout)."""
    n, h, wd, cin = x.shape
    kp, cout = wmat.shape
    xp = jnp.pad(x, ((0, 0), (1, 1), (1, 1), (0, 0)))
    cols = jnp.concatenate(
        [xp[:, dy:dy + h, dx:dx + wd, :] for dy in range(3) for dx in range(3)],
        axis=-1)                                             # (N,H,W,27)
    cols = jnp.pad(cols, ((0, 0), (0, 0), (0, 0), (0, kp - 9 * cin)))
    m = n * h * wd
    tm = 512
    mpad = _round_up(m, tm)
    a = cols.reshape(m, kp)
    if mpad != m:
        a = jnp.pad(a, ((0, mpad - m), (0, 0)))
    flops = 2 * mpad * kp * cout
    bytes_accessed = mpad * kp * 2 + kp * cout * 2 + cout * 4 + mpad * cout * 2
    out = pl.pallas_call(
        functools.partial(_gemm_bias_relu_kernel, relu=relu),
        out_shape=jax.ShapeDtypeStruct((mpad, cout), jnp.bfloat16),
        grid=(mpad // tm,),
        in_specs=[
            pl.BlockSpec((tm, kp), lambda i: (i, 0)),
            pl.BlockSpec((kp, cout), lambda i: (0, 0)),
            pl.BlockSpec((1, cout), lambda i: (0, 0)),
        ],
        out_specs=pl.BlockSpec((tm, cout), lambda i: (i, 0)),
        compiler_params=pltpu.CompilerParams(
            dimension_semantics=("parallel",),
            vmem_limit_bytes=CONV_VMEM_LIMIT),
        cost_estimate=pl.CostEstimate(flops=flops, transcendentals=0,
                                      bytes_accessed=bytes_accessed),
    )(a, wmat, b)
    return out[:m].reshape(n, h, wd, cout)


@jax.jit
def maxpool2x2(x):
    n, h, w, c = x.shape
    h2, w2 = h // 2, w // 2
    xr = x.reshape(n, h2, 2, w2, 2 * c)     # free row-major regrouping
    th = _pool_row_tile(h2)
    return pl.pallas_call(
        _maxpool2x2_kernel,
        out_shape=jax.ShapeDtypeStruct((n, h2, w2, c), x.dtype),
        grid=(n, h2 // th),
        in_specs=[pl.BlockSpec((1, th, 2, w2, 2 * c),
                               lambda i, t: (i, t, 0, 0, 0))],
        out_specs=pl.BlockSpec((1, th, w2, c), lambda i, t: (i, t, 0, 0)),
        compiler_params=pltpu.CompilerParams(
            dimension_semantics=("parallel", "parallel"),
            vmem_limit_bytes=CONV_VMEM_LIMIT),
    )(xr)


@jax.jit
def adaptive_avgpool_7x7(x):
    n, h, w, c = x.shape
    kern = functools.partial(_adaptive_avgpool_kernel, in_h=h, in_w=w, out_hw=7)
    return pl.pallas_call(
        kern,
        out_shape=jax.ShapeDtypeStruct((n, 7, 7, c), x.dtype),
        in_specs=[_VMEM],
        out_specs=_VMEM,
    )(x)


@functools.partial(jax.jit, static_argnames=("relu", "out_dtype"))
def linear_bias_relu(x, w, b, relu=True, out_dtype=jnp.float32):
    """x: (M,K) bf16 with M % 8 == 0, w: (K,N) bf16, b: (1,N) f32."""
    m, k = x.shape
    n = w.shape[1]
    tm, tn, tk = _fc_tiles(m, k, n)
    flops = 2 * m * n * k
    bytes_accessed = (m * k * 2 + k * n * 2 + n * 4
                      + m * n * jnp.dtype(out_dtype).itemsize)
    return pl.pallas_call(
        functools.partial(_linear_kernel, relu=relu),
        out_shape=jax.ShapeDtypeStruct((m, n), out_dtype),
        grid=(m // tm, n // tn, k // tk),
        in_specs=[
            pl.BlockSpec((tm, tk), lambda i, j, kk: (i, kk)),
            pl.BlockSpec((tk, tn), lambda i, j, kk: (kk, j)),
            pl.BlockSpec((1, tn), lambda i, j, kk: (0, j)),
        ],
        out_specs=pl.BlockSpec((tm, tn), lambda i, j, kk: (i, j)),
        scratch_shapes=[pltpu.VMEM((tm, tn), jnp.float32)],
        compiler_params=pltpu.CompilerParams(
            dimension_semantics=("parallel", "parallel", "arbitrary"),
            vmem_limit_bytes=FC_VMEM_LIMIT),
        cost_estimate=pl.CostEstimate(flops=flops, transcendentals=0,
                                      bytes_accessed=bytes_accessed),
    )(x, w, b)


# ----------------------------------------------------------------------------
# Deterministic synthetic parameters (same layer shapes as torchvision vgg19)
# ----------------------------------------------------------------------------
def build_params(seed=0):
    base = jax.random.PRNGKey(seed)
    counter = itertools.count()

    def nk():
        return jax.random.fold_in(base, next(counter))

    features = []
    cin_t, cin_p = 3, 3
    first = True
    for v in CFG_E:
        if v == "M":
            features.append({"type": "pool"})
            continue
        cout_t = int(v)
        cout_p = _round_up(cout_t, LANE)
        std = (2.0 / (9 * cin_t)) ** 0.5
        w = std * jax.random.normal(nk(), (3, 3, cin_t, cout_t), jnp.float32)
        b = 0.01 * jax.random.normal(nk(), (cout_t,), jnp.float32)
        b_p = jnp.pad(b, (0, cout_p - cout_t)).reshape(1, cout_p)
        if first:
            # im2col weight for the cin=3 layer: (27 -> pad 32, cout_p)
            wmat = jnp.pad(w, ((0, 0), (0, 0), (0, 0), (0, cout_p - cout_t)))
            wmat = wmat.reshape(9 * cin_t, cout_p)
            wmat = jnp.pad(wmat, ((0, FIRST_K_PAD - 9 * cin_t), (0, 0)))
            features.append({"type": "conv_first",
                             "w": wmat.astype(jnp.bfloat16),
                             "b": b_p.astype(jnp.float32)})
            first = False
        else:
            # zero-pad channel dims to multiples of 128 (math-identical)
            w = jnp.pad(w, ((0, 0), (0, 0),
                            (0, cin_p - cin_t), (0, cout_p - cout_t)))
            features.append({"type": "conv",
                             "w": w.astype(jnp.bfloat16),
                             "b": b_p.astype(jnp.float32)})
        cin_t, cin_p = cout_t, cout_p

    kfc = 512 * 7 * 7
    fc1_w = ((2.0 / kfc) ** 0.5) * jax.random.normal(nk(), (kfc, 4096),
                                                     jnp.float32)
    fc1_b = 0.01 * jax.random.normal(nk(), (1, 4096), jnp.float32)
    fc2_w = ((2.0 / 4096) ** 0.5) * jax.random.normal(nk(), (4096, 4096),
                                                      jnp.float32)
    fc2_b = 0.01 * jax.random.normal(nk(), (1, 4096), jnp.float32)
    return {"features": features,
            "fc1_w": fc1_w.astype(jnp.bfloat16), "fc1_b": fc1_b,
            "fc2_w": fc2_w.astype(jnp.bfloat16), "fc2_b": fc2_b}


# ----------------------------------------------------------------------------
# Forward pass (torchvision VGG19, classifier[6] = Identity)
# ----------------------------------------------------------------------------
def vgg19_features(x_nchw, params):
    # PyTorch NCHW input -> NHWC kernel layout, bf16 activations
    x = jnp.transpose(x_nchw, (0, 2, 3, 1)).astype(jnp.bfloat16)
    for layer in params["features"]:
        t = layer["type"]
        if t == "conv_first":
            x = conv3x3_first(x, layer["w"], layer["b"], relu=True)
        elif t == "conv":
            x = conv3x3_bias_relu(x, layer["w"], layer["b"], relu=True)
        else:
            x = maxpool2x2(x)
    if x.shape[1:3] != (7, 7):           # skip the pure-copy case (224 input)
        x = adaptive_avgpool_7x7(x)      # (N, 7, 7, 512)
    n = x.shape[0]
    # torch.flatten(x, 1) uses C,H,W ordering
    x = jnp.transpose(x, (0, 3, 1, 2)).reshape(n, -1)    # (N, 25088) bf16
    xpad = jnp.pad(x, ((0, (-n) % 8), (0, 0)))
    h1 = linear_bias_relu(xpad, params["fc1_w"], params["fc1_b"],
                          relu=True, out_dtype=jnp.bfloat16)
    h2 = linear_bias_relu(h1, params["fc2_w"], params["fc2_b"],
                          relu=True, out_dtype=jnp.float32)
    # classifier[6] is Identity; Dropout is identity in eval mode.
    return h2[:n]


def get_intermediate_layers(x_nchw, params, n_last_blocks,
                            return_class_token=True):
    # mirrors VGG19ImageNet1k.get_intermediate_layers
    return [(None, vgg19_features(x_nchw, params))]


if __name__ == "__main__":
    key = jax.random.PRNGKey(0)
    # small ImageNet-style input: batch=2, 3 channels, 32x32 spatial
    x = jax.random.normal(key, (2, 3, 32, 32), jnp.float32)

    params = build_params(seed=0)
    feats = vgg19_features(x, params)
    feats = jax.block_until_ready(feats)

    assert feats.shape == (2, 4096), feats.shape
    assert feats.dtype == jnp.float32
    assert bool(jnp.all(jnp.isfinite(feats)))
    print("KERNEL_OK")
</pallas_src>

<mosaic_0001>
module attributes {stable_mosaic.version = 11 : i64} {
  func.func @_gemm_bias_relu_kernel(%arg0: i32, %arg1: memref<512x32xbf16, #tpu.memory_space<vmem>>, %arg2: memref<32x128xbf16, #tpu.memory_space<vmem>>, %arg3: memref<1x128xf32, #tpu.memory_space<vmem>>, %arg4: memref<512x128xbf16, #tpu.memory_space<vmem>>) attributes {dimension_semantics = [#tpu.dimension_semantics<parallel>], iteration_bounds = array<i64: 4>, scalar_prefetch = 0 : i64, scratch_operands = 0 : i64, tpu.core_type = #tpu.core_type<tc>, window_params = [{transform_indices = @transform_0, window_bounds = array<i64: 512, 32>}, {pipeline_mode = #tpu.pipeline_mode<synchronous>, transform_indices = @transform_1, window_bounds = array<i64: 32, 128>}, {pipeline_mode = #tpu.pipeline_mode<synchronous>, transform_indices = @transform_2, window_bounds = array<i64: 1, 128>}, {transform_indices = @transform_3, window_bounds = array<i64: 512, 128>}]} {
    %c0 = arith.constant 0 : index
    %c0_0 = arith.constant 0 : index
    %0 = vector.load %arg1[%c0, %c0_0] : memref<512x32xbf16, #tpu.memory_space<vmem>>, vector<512x32xbf16>
    %c0_1 = arith.constant 0 : index
    %c0_2 = arith.constant 0 : index
    %1 = vector.load %arg2[%c0_1, %c0_2] : memref<32x128xbf16, #tpu.memory_space<vmem>>, vector<32x128xbf16>
    %cst = arith.constant dense<0.000000e+00> : vector<512x128xf32>
    %2 = tpu.matmul %0, %1, %cst {dimension_numbers = #tpu.dot_dimension_numbers<[1], [0], [0], [1], [0, 0, 1, 1], [], []>} : vector<512x32xbf16>, vector<32x128xbf16>, vector<512x128xf32> -> vector<512x128xf32>
    %c0_3 = arith.constant 0 : index
    %c0_4 = arith.constant 0 : index
    %3 = vector.load %arg3[%c0_3, %c0_4] : memref<1x128xf32, #tpu.memory_space<vmem>>, vector<1x128xf32>
    %4 = vector.broadcast %3 : vector<1x128xf32> to vector<512x128xf32>
    %5 = arith.addf %2, %4 : vector<512x128xf32>
    %cst_5 = arith.constant 0.000000e+00 : f32
    %6 = vector.broadcast %cst_5 : f32 to vector<512x128xf32>
    %7 = arith.maximumf %5, %6 : vector<512x128xf32>
    %8 = arith.truncf %7 : vector<512x128xf32> to vector<512x128xbf16>
    %c0_6 = arith.constant 0 : index
    %c0_7 = arith.constant 0 : index
    %9 = vector.load %arg4[%c0_6, %c0_7] : memref<512x128xbf16, #tpu.memory_space<vmem>>, vector<512x128xbf16>
    tpu.vector_store %arg4[%c0_6, %c0_7], %8 {strides = array<i32>} : memref<512x128xbf16, #tpu.memory_space<vmem>>, vector<512x128xbf16>,
    return
  }
  func.func @transform_0(%arg0: i32) -> (i32, i32) {
    %c0_i32 = arith.constant 0 : i32
    %c0_i32_0 = arith.constant 0 : i32
    return %arg0, %c0_i32 : i32, i32
  }
  func.func @transform_1(%arg0: i32) -> (i32, i32) {
    %c0_i32 = arith.constant 0 : i32
    %c0_i32_0 = arith.constant 0 : i32
    %c0_i32_1 = arith.constant 0 : i32
    return %c0_i32, %c0_i32_0 : i32, i32
  }
  func.func @transform_2(%arg0: i32) -> (i32, i32) {
    %c0_i32 = arith.constant 0 : i32
    %c0_i32_0 = arith.constant 0 : i32
    %c0_i32_1 = arith.constant 0 : i32
    return %c0_i32, %c0_i32_0 : i32, i32
  }
  func.func @transform_3(%arg0: i32) -> (i32, i32) {
    %c0_i32 = arith.constant 0 : i32
    %c0_i32_0 = arith.constant 0 : i32
    return %arg0, %c0_i32 : i32, i32
  }
}

</mosaic_0001>

<bundles_post_ra>
// kernel: conv3x3_first.1
= control target key start
LH: loop header
LB: loop body
LE: loop exit
PB: predicated region body
PF: predicated region fallthrough
CT: control target
= control target key end

     0   :  { %8 = vsyncpa [#allocation3], 0  ;;  %s1757_s0 = inlined_call_operand.vmem [shape: bf16[2048,32], index: 0, kind: input, shape index: {}]   ;;  %s1758_s1 = inlined_call_operand.vmem [shape: bf16[32,128], index: 1, kind: input, shape index: {}]   ;;  %s1759_s2 = inlined_call_operand.vmem [shape: f32[1,128], index: 2, kind: input, shape index: {}]   ;;  %s1760_s3 = inlined_call_operand.hbm [shape: bf16[2048,128], index: 3, kind: output, shape index: {}]  }
   0x1   :  { %10 = vsyncpa [#allocation3 + $0x1], 0  ;;  %s1493_s12 = smov 0   ;;  %s1495_s13 = smov 0  }
   0x2   :  { %s1497_s14 = smov 0   ;;  %s1499_s15 = smov 0  }
   0x3 LB: > { %s1514_s16 = sadd.s32 4294967295, %s1469_s15   ;;  %s953_s17 = sadd.s32 4294967294, %s1469_s15   ;;  %s1469_s15 = sphi %s1499_s15, %s1766_s15   ;;  %s1465_s14 = sphi %s1497_s14, %s1765_s14   ;;  %s1461_s13 = sphi %s1495_s13, %s1764_s13   ;;  %s1457_s12 = sphi %s1493_s12, %s1763_s12  }
   0x4   : > { %s1518_s18 = sadd.s32 1, %s1469_s15   ;;  %s91_s19 = sadd.s32 1, %s1465_s14 }
   0x5   : > { %s88_s20 = ssub.s32 %s1469_s15, %s1518_s18  ;;  %p101_p0 = scmp.ne.s32.totalorder %s1465_s14, %s1461_s13 }
   0x6   : > { %p89_p1 = scmp.eq.s32.totalorder %s88_s20, 0  ;;  %p102_p2 = scmp.eq.s32.totalorder %s1514_s16, 3 }
   0x7   : > { %p107_p3 = scmp.ne.s32.totalorder %s1461_s13, %s1457_s12  ;;  %p108_p4 = scmp.eq.s32.totalorder %s953_s17, 3 }
   0x8   : > { %s1529_s21 = scalar_select %p89_p1, %s1465_s14, %s91_s19  }
   0x9   : > { %p1531_p5 = por %p102_p2, %p101_p0  ;;  %p1535_p6 = por %p108_p4, %p107_p3 }
   0xa   : > { %p956_p7 = scmp.ge.s32.totalorder %s1469_s15, 1  ;;  %p141_p8 = scmp.lt.s32.totalorder %s1469_s15, 5 }
   0xc   : > { %p142_p9 = pnand %p956_p7, %p141_p8 }
   0xd   : > { %s958_s26 = sshll.u32 (!%p142_p9), %s1514_s16, 6  ;;  %s162_s8 = sand.u32 (!%p142_p9), 1, %s1461_s13  }
   0xe   : > { %145 = sbr.rel (%p142_p9) target bundleno = 291 (0x123), region = 32  ;;  %p166_p10 = scmp.lt.s32.totalorder (!%p142_p9), %s958_s26, 255 }
   0xf   : > { %s957_s9 = sshll.u32 (!%p142_p9), %s162_s8, 8  ;;  %s1167_s11 = sshll.u32 (!%p142_p9), %s1514_s16, 8 }
  0x10   : > { %s1631_s10 = scalar_lea.vmem (!%p142_p9), [#allocation2], %s957_s9  ;;  %s887_s20 = scalar_lea.hbm (!%p142_p9), %s1760_s3, %s1167_s11 }
  0x11   : > { %s888_s16 = sshll.u32 (!%p142_p9), %s1631_s10, 4  ;;  %s890_s24 = sshll.u32 (!%p142_p9), %s887_s20, 4  ;;  %s889_s16 = int_to_ptr.vmem [resolvable:$true] %s888_s16  ;;  %s891_s24 = int_to_ptr.hbm [resolvable:$true] %s890_s24 }
  0x12   : > { %s876_s25 = scalar_lea.sflag (!%p142_p9), [#allocation3], %s162_s8  ;;  %s1427_s30 = scalar_lea.hbm (!%p142_p9), %s1760_s3, 1024 }
  0x13   : > { %v1166_v0 = vld [vmem:[%s1758_s1 + $0x8] sm:$0xff]  ;;  %v1165_v1 = vld [vmem:[%s1758_s1] sm:$0xff]  ;;  %s1768_s26 = smov (!%p166_p10, %s958_s26), 255  ;;  %vm417_vm0 = vcmask 261120  }
  0x14   : > { %520 = vmatpush.bf16.msra.mxu0 %v1166_v0  ;;  %1359 = vmatpush.bf16.msra.mxu1 %v1166_v0  ;;  %s959_s29 = sshll.u32 %s1768_s26, 2  ;;  %v1620_v36 = vld [vmem:[%s1759_s2] ss:$0 sm:$0xff]  ;;  %s1421_s26 = sshra.s32 %s891_s24, 4  ;;  %s1422_s26 = int_to_ptr.hbm [resolvable:$true] %s1421_s26 }
  0x15   : > { %1360 = vmatpush.bf16.msra.mxu2 %v1166_v0  ;;  %1361 = vmatpush.bf16.msra.mxu3 %v1166_v0  ;;  %s1551_s5 = scalar_lea.vmem %s1757_s0, %s959_s29  ;;  %s1423_s27 = scalar_lea.hbm %s1422_s26, 256 }
  0x16   : > { %v1133_v2 = vld [vmem:[%s1551_s5] sm:$0xff]  ;;  %v1134_v6 = vld [vmem:[%s1551_s5 + $0x8] sm:$0xff]  ;;  %v1135_v10 = vld [vmem:[%s1551_s5 + $0x10] sm:$0xff]  ;;  %p1424_p11 = scmp.ne.s32.totalorder %s1422_s26, %s1423_s27  ;;  %p1428_p0 = scmp.lt.s32.totalorder %s1422_s26, %s1760_s3 }
  0x17   : > { %v1141_v3 = vld [vmem:[%s1551_s5 + $0x40] sm:$0xff]  ;;  %v1142_v7 = vld [vmem:[%s1551_s5 + $0x48] sm:$0xff]  ;;  %v1143_v11 = vld [vmem:[%s1551_s5 + $0x50] sm:$0xff]  ;;  %p1429_p1 = scmp.lt.s32.totalorder %s1427_s30, %s1423_s27 }
  0x18   : > { %521 = vmatpush.bf16.msra.mxu0 %v1165_v1  ;;  %1362 = vmatpush.bf16.msra.mxu1 %v1165_v1  ;;  %v1149_v4 = vld [vmem:[%s1551_s5 + $0x80] sm:$0xff]  ;;  %v1150_v8 = vld [vmem:[%s1551_s5 + $0x88] sm:$0xff]  ;;  %v1151_v12 = vld [vmem:[%s1551_s5 + $0x90] sm:$0xff]  ;;  %p1425_p12 = pnand %p1424_p11, %p1531_p5 }
  0x19   : > { %1363 = vmatpush.bf16.msra.mxu2 %v1165_v1  ;;  %1364 = vmatpush.bf16.msra.mxu3 %v1165_v1  ;;  %v1157_v5 = vld [vmem:[%s1551_s5 + $0xc0] sm:$0xff]  ;;  %v1158_v9 = vld [vmem:[%s1551_s5 + $0xc8] sm:$0xff]  ;;  %v1159_v13 = vld [vmem:[%s1551_s5 + $0xd0] sm:$0xff]  ;;  %p1430_p2 = por %p1429_p1, %p1428_p0 }
  0x1a   : > { %v1136_v14 = vld [vmem:[%s1551_s5 + $0x18] sm:$0xff]  ;;  %v1137_v18 = vld [vmem:[%s1551_s5 + $0x20] sm:$0xff]  ;;  %v1138_v22 = vld [vmem:[%s1551_s5 + $0x28] sm:$0xff]  ;;  %p1426_p13 = pneg %p1425_p12 }
  0x1b   : > { %1096 = vmatmul.msk.bf16.vlgmr.msra.gmra.mxu0 %vm417_vm0, %v1133_v2  ;;  %1104 = vmatmul.msk.bf16.vlgmr.msra.gmra.mxu1 %vm417_vm0, %v1141_v3  ;;  %v1144_v15 = vld [vmem:[%s1551_s5 + $0x58] sm:$0xff]  ;;  %v1145_v19 = vld [vmem:[%s1551_s5 + $0x60] sm:$0xff]  ;;  %v1146_v23 = vld [vmem:[%s1551_s5 + $0x68] sm:$0xff] }
  0x1c   : > { %1112 = vmatmul.msk.bf16.vlgmr.msra.gmra.mxu2 %vm417_vm0, %v1149_v4  ;;  %1120 = vmatmul.msk.bf16.vlgmr.msra.gmra.mxu3 %vm417_vm0, %v1157_v5  ;;  %v1152_v16 = vld [vmem:[%s1551_s5 + $0x98] sm:$0xff]  ;;  %v1153_v20 = vld [vmem:[%s1551_s5 + $0xa0] sm:$0xff]  ;;  %v1154_v24 = vld [vmem:[%s1551_s5 + $0xa8] sm:$0xff]  ;;  %p1431_p3 = pnand %p1430_p2, %p1426_p13 }
  0x1d   : > { %v1160_v17 = vld [vmem:[%s1551_s5 + $0xd8] sm:$0xff]  ;;  %v1161_v21 = vld [vmem:[%s1551_s5 + $0xe0] sm:$0xff]  ;;  %v1162_v25 = vld [vmem:[%s1551_s5 + $0xe8] sm:$0xff] }
  0x1e   : > { %v1139_v26 = vld [vmem:[%s1551_s5 + $0x30] sm:$0xff]  ;;  %v1140_v30 = vld [vmem:[%s1551_s5 + $0x38] sm:$0xff] }
  0x1f   : > { %v1147_v27 = vld [vmem:[%s1551_s5 + $0x70] sm:$0xff]  ;;  %v1148_v31 = vld [vmem:[%s1551_s5 + $0x78] sm:$0xff] }
  0x20   : > { %v1155_v28 = vld [vmem:[%s1551_s5 + $0xb0] sm:$0xff]  ;;  %v1156_v32 = vld [vmem:[%s1551_s5 + $0xb8] sm:$0xff] }
  0x21   : > { %v1163_v29 = vld [vmem:[%s1551_s5 + $0xf0] sm:$0xff]  ;;  %v1164_v33 = vld [vmem:[%s1551_s5 + $0xf8] sm:$0xff] }
  0x2b   : > { %1097 = vmatmul.msk.bf16.gmra.mxu0 %vm417_vm0, %v1134_v6  ;;  %1105 = vmatmul.msk.bf16.gmra.mxu1 %vm417_vm0, %v1142_v7 }
  0x2c   : > { %1113 = vmatmul.msk.bf16.gmra.mxu2 %vm417_vm0, %v1150_v8  ;;  %1121 = vmatmul.msk.bf16.gmra.mxu3 %vm417_vm0, %v1158_v9 }
  0x3b   : > { %1098 = vmatmul.msk.bf16.gmra.mxu0 %vm417_vm0, %v1135_v10  ;;  %1106 = vmatmul.msk.bf16.gmra.mxu1 %vm417_vm0, %v1143_v11 }
  0x3c   : > { %1114 = vmatmul.msk.bf16.gmra.mxu2 %vm417_vm0, %v1151_v12  ;;  %1122 = vmatmul.msk.bf16.gmra.mxu3 %vm417_vm0, %v1159_v13 }
  0x4b   : > { %1099 = vmatmul.msk.bf16.gmra.mxu0 %vm417_vm0, %v1136_v14  ;;  %1107 = vmatmul.msk.bf16.gmra.mxu1 %vm417_vm0, %v1144_v15 }
  0x4c   : > { %1115 = vmatmul.msk.bf16.gmra.mxu2 %vm417_vm0, %v1152_v16  ;;  %1123 = vmatmul.msk.bf16.gmra.mxu3 %vm417_vm0, %v1160_v17 }
  0x5b   : > { %1100 = vmatmul.msk.bf16.gmra.mxu0 %vm417_vm0, %v1137_v18  ;;  %1108 = vmatmul.msk.bf16.gmra.mxu1 %vm417_vm0, %v1145_v19 }
  0x5c   : > { %1116 = vmatmul.msk.bf16.gmra.mxu2 %vm417_vm0, %v1153_v20  ;;  %1124 = vmatmul.msk.bf16.gmra.mxu3 %vm417_vm0, %v1161_v21 }
  0x6b   : > { %1101 = vmatmul.msk.bf16.gmra.mxu0 %vm417_vm0, %v1138_v22  ;;  %1109 = vmatmul.msk.bf16.gmra.mxu1 %vm417_vm0, %v1146_v23 }
  0x6c   : > { %1117 = vmatmul.msk.bf16.gmra.mxu2 %vm417_vm0, %v1154_v24  ;;  %1125 = vmatmul.msk.bf16.gmra.mxu3 %vm417_vm0, %v1162_v25 }
  0x7b   : > { %1102 = vmatmul.msk.bf16.gmra.mxu0 %vm417_vm0, %v1139_v26  ;;  %1110 = vmatmul.msk.bf16.gmra.mxu1 %vm417_vm0, %v1147_v27 }
  0x7c   : > { %1118 = vmatmul.msk.bf16.gmra.mxu2 %vm417_vm0, %v1155_v28  ;;  %1126 = vmatmul.msk.bf16.gmra.mxu3 %vm417_vm0, %v1163_v29 }
  0x8b   : > { %1103 = vmatmul.msk.bf16.gmra.mxu0 %vm417_vm0, %v1140_v30  ;;  %1111 = vmatmul.msk.bf16.gmra.mxu1 %vm417_vm0, %v1148_v31 }
  0x8c   : > { %1119 = vmatmul.msk.bf16.gmra.mxu2 %vm417_vm0, %v1156_v32  ;;  %1127 = vmatmul.msk.bf16.gmra.mxu3 %vm417_vm0, %v1164_v33 }
  0x98   : > { %v523_v34 = vpop.f32.mrf.mxu0  ;;  %v563_v35 = vpop.f32.mrf.mxu1 }
  0x99   : > { %v524_v37 = vadd.f32 %v1620_v36, %v523_v34  ;;  %v564_v38 = vadd.f32 %v1620_v36, %v563_v35 }
  0x9b   : > { %v683_v45 = vmax.f32 %v524_v37, 0.0  ;;  %v699_v46 = vmax.f32 %v564_v38, 0.0 }
  0x9f   : > { %v603_v39 = vpop.f32.mrf.mxu2  ;;  %v643_v40 = vpop.f32.mrf.mxu3 }
  0xa0   : > { %v525_v41 = vpop.f32.mrf.mxu0  ;;  %v565_v42 = vpop.f32.mrf.mxu1  ;;  %v604_v51 = vadd.f32 %v1620_v36, %v603_v39  ;;  %v644_v52 = vadd.f32 %v1620_v36, %v643_v40 }
  0xa1   : > { %v526_v43 = vadd.f32 %v1620_v36, %v525_v41  ;;  %v566_v44 = vadd.f32 %v1620_v36, %v565_v42 }
  0xa2   : > { %v715_v59 = vmax.f32 %v604_v51, 0.0  ;;  %v731_v60 = vmax.f32 %v644_v52, 0.0 }
  0xa3   : > { %v684_v47 = vmax.f32 %v526_v43, 0.0  ;;  %v700_v48 = vmax.f32 %v566_v44, 0.0 }
  0xa5   : > { %v1171_v49 = vpack.c.bf16 %v684_v47, %v683_v45  ;;  %v1211_v50 = vpack.c.bf16 %v700_v48, %v699_v46 }
  0xa7   : > { %1172 = vst [vmem:[%s1631_s10] sm:$0xff] %v1171_v49   ;;  %v605_v53 = vpop.f32.mrf.mxu2  ;;  %v645_v54 = vpop.f32.mrf.mxu3 }
  0xa8   : > { %1335 = vst [vmem:[%s1631_s10 + $0x40] sm:$0xff] %v1211_v50   ;;  %v606_v55 = vadd.f32 %v1620_v36, %v605_v53  ;;  %v646_v56 = vadd.f32 %v1620_v36, %v645_v54  ;;  %v528_v57 = vpop.f32.mrf.mxu0  ;;  %v568_v58 = vpop.f32.mrf.mxu1 }
  0xa9   : > { %v529_v1 = vadd.f32 %v1620_v36, %v528_v57  ;;  %v569_v2 = vadd.f32 %v1620_v36, %v568_v58 }
  0xaa   : > { %v716_v61 = vmax.f32 %v606_v55, 0.0  ;;  %v732_v62 = vmax.f32 %v646_v56, 0.0 }
  0xab   : > { %v685_v9 = vmax.f32 %v529_v1, 0.0  ;;  %v701_v10 = vmax.f32 %v569_v2, 0.0 }
  0xac   : > { %v1251_v63 = vpack.c.bf16 %v716_v61, %v715_v59  ;;  %v1291_v0 = vpack.c.bf16 %v732_v62, %v731_v60 }
  0xae   : > { %1343 = vst [vmem:[%s1631_s10 + $0x80] sm:$0xff] %v1251_v63  }
  0xaf   : > { %1351 = vst [vmem:[%s1631_s10 + $0xc0] sm:$0xff] %v1291_v0   ;;  %v608_v3 = vpop.f32.mrf.mxu2  ;;  %v648_v4 = vpop.f32.mrf.mxu3 }
  0xb0   : > { %v530_v5 = vpop.f32.mrf.mxu0  ;;  %v570_v6 = vpop.f32.mrf.mxu1  ;;  %v609_v15 = vadd.f32 %v1620_v36, %v608_v3  ;;  %v649_v16 = vadd.f32 %v1620_v36, %v648_v4 }
  0xb1   : > { %v531_v7 = vadd.f32 %v1620_v36, %v530_v5  ;;  %v571_v8 = vadd.f32 %v1620_v36, %v570_v6 }
  0xb2   : > { %v717_v23 = vmax.f32 %v609_v15, 0.0  ;;  %v733_v24 = vmax.f32 %v649_v16, 0.0 }
  0xb3   : > { %v686_v11 = vmax.f32 %v531_v7, 0.0  ;;  %v702_v12 = vmax.f32 %v571_v8, 0.0 }
  0xb5   : > { %v1176_v13 = vpack.c.bf16 %v686_v11, %v685_v9  ;;  %v1216_v14 = vpack.c.bf16 %v702_v12, %v701_v10 }
  0xb7   : > { %1328 = vst [vmem:[%s1631_s10 + $0x8] sm:$0xff] %v1176_v13   ;;  %v610_v17 = vpop.f32.mrf.mxu2  ;;  %v650_v18 = vpop.f32.mrf.mxu3 }
  0xb8   : > { %1336 = vst [vmem:[%s1631_s10 + $0x48] sm:$0xff] %v1216_v14   ;;  %v611_v19 = vadd.f32 %v1620_v36, %v610_v17  ;;  %v651_v20 = vadd.f32 %v1620_v36, %v650_v18  ;;  %v533_v21 = vpop.f32.mrf.mxu0  ;;  %v573_v22 = vpop.f32.mrf.mxu1 }
  0xb9   : > { %v534_v29 = vadd.f32 %v1620_v36, %v533_v21  ;;  %v574_v30 = vadd.f32 %v1620_v36, %v573_v22 }
  0xba   : > { %v718_v25 = vmax.f32 %v611_v19, 0.0  ;;  %v734_v26 = vmax.f32 %v651_v20, 0.0 }
  0xbb   : > { %v687_v38 = vmax.f32 %v534_v29, 0.0  ;;  %v703_v39 = vmax.f32 %v574_v30, 0.0 }
  0xbc   : > { %v1256_v27 = vpack.c.bf16 %v718_v25, %v717_v23  ;;  %v1296_v28 = vpack.c.bf16 %v734_v26, %v733_v24 }
  0xbe   : > { %1344 = vst [vmem:[%s1631_s10 + $0x88] sm:$0xff] %v1256_v27  }
  0xbf   : > { %1352 = vst [vmem:[%s1631_s10 + $0xc8] sm:$0xff] %v1296_v28   ;;  %v613_v31 = vpop.f32.mrf.mxu2  ;;  %v653_v32 = vpop.f32.mrf.mxu3 }
  0xc0   : > { %v535_v33 = vpop.f32.mrf.mxu0  ;;  %v575_v34 = vpop.f32.mrf.mxu1  ;;  %v614_v44 = vadd.f32 %v1620_v36, %v613_v31  ;;  %v654_v45 = vadd.f32 %v1620_v36, %v653_v32 }
  0xc1   : > { %v536_v35 = vadd.f32 %v1620_v36, %v535_v33  ;;  %v576_v37 = vadd.f32 %v1620_v36, %v575_v34 }
  0xc2   : > { %v719_v52 = vmax.f32 %v614_v44, 0.0  ;;  %v735_v53 = vmax.f32 %v654_v45, 0.0 }
  0xc3   : > { %v688_v40 = vmax.f32 %v536_v35, 0.0  ;;  %v704_v41 = vmax.f32 %v576_v37, 0.0 }
  0xc5   : > { %v1181_v42 = vpack.c.bf16 %v688_v40, %v687_v38  ;;  %v1221_v43 = vpack.c.bf16 %v704_v41, %v703_v39 }
  0xc7   : > { %1329 = vst [vmem:[%s1631_s10 + $0x10] sm:$0xff] %v1181_v42   ;;  %v615_v46 = vpop.f32.mrf.mxu2  ;;  %v655_v47 = vpop.f32.mrf.mxu3 }
  0xc8   : > { %1337 = vst [vmem:[%s1631_s10 + $0x50] sm:$0xff] %v1221_v43   ;;  %v616_v48 = vadd.f32 %v1620_v36, %v615_v46  ;;  %v656_v49 = vadd.f32 %v1620_v36, %v655_v47  ;;  %v538_v50 = vpop.f32.mrf.mxu0  ;;  %v578_v51 = vpop.f32.mrf.mxu1 }
  0xc9   : > { %v539_v58 = vadd.f32 %v1620_v36, %v538_v50  ;;  %v579_v59 = vadd.f32 %v1620_v36, %v578_v51 }
  0xca   : > { %v720_v54 = vmax.f32 %v616_v48, 0.0  ;;  %v736_v55 = vmax.f32 %v656_v49, 0.0 }
  0xcb   : > { %v689_v2 = vmax.f32 %v539_v58, 0.0  ;;  %v705_v3 = vmax.f32 %v579_v59, 0.0 }
  0xcc   : > { %v1261_v56 = vpack.c.bf16 %v720_v54, %v719_v52  ;;  %v1301_v57 = vpack.c.bf16 %v736_v55, %v735_v53 }
  0xce   : > { %1345 = vst [vmem:[%s1631_s10 + $0x90] sm:$0xff] %v1261_v56  }
  0xcf   : > { %1353 = vst [vmem:[%s1631_s10 + $0xd0] sm:$0xff] %v1301_v57   ;;  %v618_v60 = vpop.f32.mrf.mxu2  ;;  %v658_v61 = vpop.f32.mrf.mxu3 }
  0xd0   : > { %v540_v62 = vpop.f32.mrf.mxu0  ;;  %v580_v63 = vpop.f32.mrf.mxu1  ;;  %v619_v8 = vadd.f32 %v1620_v36, %v618_v60  ;;  %v659_v9 = vadd.f32 %v1620_v36, %v658_v61 }
  0xd1   : > { %v541_v0 = vadd.f32 %v1620_v36, %v540_v62  ;;  %v581_v1 = vadd.f32 %v1620_v36, %v580_v63 }
  0xd2   : > { %v721_v16 = vmax.f32 %v619_v8, 0.0  ;;  %v737_v17 = vmax.f32 %v659_v9, 0.0 }
  0xd3   : > { %v690_v4 = vmax.f32 %v541_v0, 0.0  ;;  %v706_v5 = vmax.f32 %v581_v1, 0.0 }
  0xd5   : > { %v1186_v6 = vpack.c.bf16 %v690_v4, %v689_v2  ;;  %v1226_v7 = vpack.c.bf16 %v706_v5, %v705_v3 }
  0xd7   : > { %1330 = vst [vmem:[%s1631_s10 + $0x18] sm:$0xff] %v1186_v6   ;;  %v620_v10 = vpop.f32.mrf.mxu2  ;;  %v660_v11 = vpop.f32.mrf.mxu3 }
  0xd8   : > { %1338 = vst [vmem:[%s1631_s10 + $0x58] sm:$0xff] %v1226_v7   ;;  %v621_v12 = vadd.f32 %v1620_v36, %v620_v10  ;;  %v661_v13 = vadd.f32 %v1620_v36, %v660_v11  ;;  %v543_v14 = vpop.f32.mrf.mxu0  ;;  %v583_v15 = vpop.f32.mrf.mxu1 }
  0xd9   : > { %v544_v22 = vadd.f32 %v1620_v36, %v543_v14  ;;  %v584_v23 = vadd.f32 %v1620_v36, %v583_v15 }
  0xda   : > { %v722_v18 = vmax.f32 %v621_v12, 0.0  ;;  %v738_v19 = vmax.f32 %v661_v13, 0.0 }
  0xdb   : > { %v691_v30 = vmax.f32 %v544_v22, 0.0  ;;  %v707_v31 = vmax.f32 %v584_v23, 0.0 }
  0xdc   : > { %v1266_v20 = vpack.c.bf16 %v722_v18, %v721_v16  ;;  %v1306_v21 = vpack.c.bf16 %v738_v19, %v737_v17 }
  0xde   : > { %1346 = vst [vmem:[%s1631_s10 + $0x98] sm:$0xff] %v1266_v20  }
  0xdf   : > { %1354 = vst [vmem:[%s1631_s10 + $0xd8] sm:$0xff] %v1306_v21   ;;  %v623_v24 = vpop.f32.mrf.mxu2  ;;  %v663_v25 = vpop.f32.mrf.mxu3 }
  0xe0   : > { %v545_v26 = vpop.f32.mrf.mxu0  ;;  %v585_v27 = vpop.f32.mrf.mxu1  ;;  %v624_v37 = vadd.f32 %v1620_v36, %v623_v24  ;;  %v664_v38 = vadd.f32 %v1620_v36, %v663_v25 }
  0xe1   : > { %v546_v28 = vadd.f32 %v1620_v36, %v545_v26  ;;  %v586_v29 = vadd.f32 %v1620_v36, %v585_v27 }
  0xe2   : > { %v723_v45 = vmax.f32 %v624_v37, 0.0  ;;  %v739_v46 = vmax.f32 %v664_v38, 0.0 }
  0xe3   : > { %v692_v32 = vmax.f32 %v546_v28, 0.0  ;;  %v708_v33 = vmax.f32 %v586_v29, 0.0 }
  0xe5   : > { %v1191_v34 = vpack.c.bf16 %v692_v32, %v691_v30  ;;  %v1231_v35 = vpack.c.bf16 %v708_v33, %v707_v31 }
  0xe7   : > { %1331 = vst [vmem:[%s1631_s10 + $0x20] sm:$0xff] %v1191_v34   ;;  %v625_v39 = vpop.f32.mrf.mxu2  ;;  %v665_v40 = vpop.f32.mrf.mxu3 }
  0xe8   : > { %1339 = vst [vmem:[%s1631_s10 + $0x60] sm:$0xff] %v1231_v35   ;;  %v626_v41 = vadd.f32 %v1620_v36, %v625_v39  ;;  %v666_v42 = vadd.f32 %v1620_v36, %v665_v40  ;;  %v548_v43 = vpop.f32.mrf.mxu0  ;;  %v588_v44 = vpop.f32.mrf.mxu1 }
  0xe9   : > { %v549_v51 = vadd.f32 %v1620_v36, %v548_v43  ;;  %v589_v52 = vadd.f32 %v1620_v36, %v588_v44 }
  0xea   : > { %v724_v47 = vmax.f32 %v626_v41, 0.0  ;;  %v740_v48 = vmax.f32 %v666_v42, 0.0 }
  0xeb   : > { %v693_v59 = vmax.f32 %v549_v51, 0.0  ;;  %v709_v60 = vmax.f32 %v589_v52, 0.0 }
  0xec   : > { %v1271_v49 = vpack.c.bf16 %v724_v47, %v723_v45  ;;  %v1311_v50 = vpack.c.bf16 %v740_v48, %v739_v46 }
  0xee   : > { %1347 = vst [vmem:[%s1631_s10 + $0xa0] sm:$0xff] %v1271_v49  }
  0xef   : > { %1355 = vst [vmem:[%s1631_s10 + $0xe0] sm:$0xff] %v1311_v50   ;;  %v628_v53 = vpop.f32.mrf.mxu2  ;;  %v668_v54 = vpop.f32.mrf.mxu3 }
  0xf0   : > { %v550_v55 = vpop.f32.mrf.mxu0  ;;  %v590_v56 = vpop.f32.mrf.mxu1  ;;  %v629_v1 = vadd.f32 %v1620_v36, %v628_v53  ;;  %v669_v2 = vadd.f32 %v1620_v36, %v668_v54 }
  0xf1   : > { %v551_v57 = vadd.f32 %v1620_v36, %v550_v55  ;;  %v591_v58 = vadd.f32 %v1620_v36, %v590_v56 }
  0xf2   : > { %v725_v9 = vmax.f32 %v629_v1, 0.0  ;;  %v741_v10 = vmax.f32 %v669_v2, 0.0 }
  0xf3   : > { %v694_v61 = vmax.f32 %v551_v57, 0.0  ;;  %v710_v62 = vmax.f32 %v591_v58, 0.0 }
  0xf5   : > { %v1196_v63 = vpack.c.bf16 %v694_v61, %v693_v59  ;;  %v1236_v0 = vpack.c.bf16 %v710_v62, %v709_v60 }
  0xf7   : > { %1332 = vst [vmem:[%s1631_s10 + $0x28] sm:$0xff] %v1196_v63   ;;  %v630_v3 = vpop.f32.mrf.mxu2  ;;  %v670_v4 = vpop.f32.mrf.mxu3 }
  0xf8   : > { %1340 = vst [vmem:[%s1631_s10 + $0x68] sm:$0xff] %v1236_v0   ;;  %v631_v5 = vadd.f32 %v1620_v36, %v630_v3  ;;  %v671_v6 = vadd.f32 %v1620_v36, %v670_v4  ;;  %v553_v7 = vpop.f32.mrf.mxu0  ;;  %v593_v8 = vpop.f32.mrf.mxu1 }
  0xf9   : > { %v554_v15 = vadd.f32 %v1620_v36, %v553_v7  ;;  %v594_v16 = vadd.f32 %v1620_v36, %v593_v8 }
  0xfa   : > { %v726_v11 = vmax.f32 %v631_v5, 0.0  ;;  %v742_v12 = vmax.f32 %v671_v6, 0.0 }
  0xfb   : > { %v695_v23 = vmax.f32 %v554_v15, 0.0  ;;  %v711_v24 = vmax.f32 %v594_v16, 0.0 }
  0xfc   : > { %v1276_v13 = vpack.c.bf16 %v726_v11, %v725_v9  ;;  %v1316_v14 = vpack.c.bf16 %v742_v12, %v741_v10 }
  0xfe   : > { %1348 = vst [vmem:[%s1631_s10 + $0xa8] sm:$0xff] %v1276_v13  }
  0xff   : > { %1356 = vst [vmem:[%s1631_s10 + $0xe8] sm:$0xff] %v1316_v14   ;;  %v633_v17 = vpop.f32.mrf.mxu2  ;;  %v673_v18 = vpop.f32.mrf.mxu3 }
 0x100   : > { %v555_v19 = vpop.f32.mrf.mxu0  ;;  %v595_v20 = vpop.f32.mrf.mxu1  ;;  %v634_v29 = vadd.f32 %v1620_v36, %v633_v17  ;;  %v674_v30 = vadd.f32 %v1620_v36, %v673_v18 }
 0x101   : > { %v556_v21 = vadd.f32 %v1620_v36, %v555_v19  ;;  %v596_v22 = vadd.f32 %v1620_v36, %v595_v20 }
 0x102   : > { %v727_v38 = vmax.f32 %v634_v29, 0.0  ;;  %v743_v39 = vmax.f32 %v674_v30, 0.0 }
 0x103   : > { %v696_v25 = vmax.f32 %v556_v21, 0.0  ;;  %v712_v26 = vmax.f32 %v596_v22, 0.0 }
 0x105   : > { %v1201_v27 = vpack.c.bf16 %v696_v25, %v695_v23  ;;  %v1241_v28 = vpack.c.bf16 %v712_v26, %v711_v24 }
 0x107   : > { %1333 = vst [vmem:[%s1631_s10 + $0x30] sm:$0xff] %v1201_v27   ;;  %v635_v31 = vpop.f32.mrf.mxu2  ;;  %v675_v32 = vpop.f32.mrf.mxu3 }
 0x108   : > { %1341 = vst [vmem:[%s1631_s10 + $0x70] sm:$0xff] %v1241_v28   ;;  %v636_v33 = vadd.f32 %v1620_v36, %v635_v31  ;;  %v676_v34 = vadd.f32 %v1620_v36, %v675_v32  ;;  %v558_v35 = vpop.f32.mrf.mxu0  ;;  %v598_v37 = vpop.f32.mrf.mxu1 }
 0x109   : > { %v559_v44 = vadd.f32 %v1620_v36, %v558_v35  ;;  %v599_v45 = vadd.f32 %v1620_v36, %v598_v37 }
 0x10a   : > { %v728_v40 = vmax.f32 %v636_v33, 0.0  ;;  %v744_v41 = vmax.f32 %v676_v34, 0.0 }
 0x10b   : > { %v697_v52 = vmax.f32 %v559_v44, 0.0  ;;  %v713_v53 = vmax.f32 %v599_v45, 0.0 }
 0x10c   : > { %v1281_v42 = vpack.c.bf16 %v728_v40, %v727_v38  ;;  %v1321_v43 = vpack.c.bf16 %v744_v41, %v743_v39 }
 0x10e   : > { %1349 = vst [vmem:[%s1631_s10 + $0xb0] sm:$0xff] %v1281_v42  }
 0x10f   : > { %1357 = vst [vmem:[%s1631_s10 + $0xf0] sm:$0xff] %v1321_v43   ;;  %v638_v46 = vpop.f32.mrf.mxu2  ;;  %v678_v47 = vpop.f32.mrf.mxu3 }
 0x110   : > { %v560_v48 = vpop.f32.mrf.mxu0  ;;  %v600_v49 = vpop.f32.mrf.mxu1  ;;  %v639_v58 = vadd.f32 %v1620_v36, %v638_v46  ;;  %v679_v59 = vadd.f32 %v1620_v36, %v678_v47 }
 0x111   : > { %v561_v50 = vadd.f32 %v1620_v36, %v560_v48  ;;  %v601_v51 = vadd.f32 %v1620_v36, %v600_v49 }
 0x112   : > { %v729_v0 = vmax.f32 %v639_v58, 0.0  ;;  %v745_v1 = vmax.f32 %v679_v59, 0.0 }
 0x113   : > { %v698_v54 = vmax.f32 %v561_v50, 0.0  ;;  %v714_v55 = vmax.f32 %v601_v51, 0.0 }
 0x115   : > { %v1206_v56 = vpack.c.bf16 %v698_v54, %v697_v52  ;;  %v1246_v57 = vpack.c.bf16 %v714_v55, %v713_v53 }
 0x117   : > { %1334 = vst [vmem:[%s1631_s10 + $0x38] sm:$0xff] %v1206_v56   ;;  %v640_v60 = vpop.f32.mrf.mxu2  ;;  %v680_v61 = vpop.f32.mrf.mxu3 }
 0x118   : > { %1342 = vst [vmem:[%s1631_s10 + $0x78] sm:$0xff] %v1246_v57   ;;  %v641_v62 = vadd.f32 %v1620_v36, %v640_v60  ;;  %v681_v63 = vadd.f32 %v1620_v36, %v680_v61 }
 0x11a   : > { %v730_v2 = vmax.f32 %v641_v62, 0.0  ;;  %v746_v3 = vmax.f32 %v681_v63, 0.0 }
 0x11c   : > { %v1286_v4 = vpack.c.bf16 %v730_v2, %v729_v0  ;;  %v1326_v5 = vpack.c.bf16 %v746_v3, %v745_v1 }
 0x11e   : > { %1350 = vst [vmem:[%s1631_s10 + $0xb8] sm:$0xff] %v1286_v4  }
 0x11f   : > { %1358 = vst [vmem:[%s1631_s10 + $0xf8] sm:$0xff] %v1326_v5  }
 0x120   : > { %1434 = shalt.err (!%p1431_p3)
}
 0x121   : > { %s1471_s6 = smov 64   ;;  %s1472_s7 = smov 4  }
 0x122   : > { %1365 = dma.vmem_to_hbm [thread:$0]  (%p1531_p5), %s889_s16, 4096, %s891_s24, %s876_s25, %s1471_s6, %s1471_s6, %s1472_s7  }
 0x123 PF: > { %p1371_p4 = scmp.ge.s32.totalorder %s1469_s15, 2  ;;  %s905_s8 = sand.u32 1, %s1457_s12  }
 0x124   : > { %s906_s9 = scalar_lea.sflag [#allocation3], %s905_s8 }
 0x125   : > { %p1368_p7 = pnand %p1371_p4, %p1535_p6 }
 0x127   : > { %p1369_p8 = pneg %p1368_p7 }
 0x129   : > { %1452 = dma.done.wait (%p1369_p8), %s906_s9, 4096  }
 0x12a   : > { %1454 = vsyncadd (%p1369_p8), %s906_s9, 4294963200  ;;  %p13_p9 = scmp.ge.s32.totalorder %s1518_s18, 6   ;;  %s1763_s12 = smov %s1461_s13 }
 0x12b   : > { %s1764_s13 = smov %s1465_s14  ;;  %s1765_s14 = smov %s1529_s21 }
 0x12c   : > { %s1766_s15 = smov %s1518_s18  ;;  %15 = sbr.rel (!%p13_p9) target bundleno = 3 (0x3), region = 67 }
 0x131   :  { %912 = vsyncpa [#allocation3], 1 }
 0x132   :  { %914 = vsyncpa [#allocation3 + $0x1], 1 }

</bundles_post_ra>
